<compile_context>
chip_gen: v7x
topology: tpu7x:2x2x1
jax: 0.10.0
libtpu: 0.0.40
codegen_flags: <defaults>
</compile_context>

<pallas_src>
import functools

import jax
import jax.numpy as jnp
from jax.experimental import pallas as pl
from jax.experimental.pallas import tpu as pltpu


def _round_up(x, m):
    return (x + m - 1) // m * m


def _vmem_capacity_bytes():
    try:
        info = pltpu.get_tpu_info()
        cap = getattr(info, "vmem_capacity_bytes", None)
        if cap:
            return int(cap)
    except Exception:
        pass
    return 64 * 1024 * 1024  # v7x-safe default


_VMEM_CAP = _vmem_capacity_bytes()                       # 128 MiB v5e/v6e, 64 MiB v7x
_VMEM_LIMIT = min(_VMEM_CAP * 3 // 4, 100 * 1024 * 1024)
# Combined table bytes we allow resident in VMEM (headroom for buffering + temps).
_RESIDENT_TABLE_BYTES = _VMEM_LIMIT // 4
_ONE_HOT_BYTES = 2 * 1024 * 1024                         # cap on (b_tile, V) one-hot temp


def _log_sigmoid(x):
    # Numerically stable log(sigmoid(x)); kept as log(1+exp) for portable lowering.
    return jnp.minimum(x, 0.0) - jnp.log(1.0 + jnp.exp(-jnp.abs(x)))


# ---------------------------------------------------------------------------
# Fused kernel: one-hot MXU gathers + loss accumulation, tiled over batch.
# ---------------------------------------------------------------------------

def _fused_nsg_kernel(tgt_ids_ref, cn_ids_ref, in_tbl_ref, out_tbl_ref,
                      pos_ref, neg_ref, *, b_true, k_neg):
    i = pl.program_id(0)

    @pl.when(i == 0)
    def _init():
        pos_ref[...] = jnp.zeros_like(pos_ref)
        neg_ref[...] = jnp.zeros_like(neg_ref)

    b_tile = tgt_ids_ref.shape[0]
    vocab = in_tbl_ref.shape[0]

    iota_v = jax.lax.broadcasted_iota(jnp.int32, (b_tile, vocab), 1)
    # Mask out padded batch rows (true batch size is b_true).
    row = jax.lax.broadcasted_iota(jnp.int32, (b_tile, 1), 0) + i * b_tile
    mask = (row < b_true).astype(jnp.float32)                    # (b_tile, 1)

    # Target-word gather as a one-hot matmul on the MXU (no per-row loads).
    tgt_oh = (tgt_ids_ref[...] == iota_v).astype(jnp.float32)    # (b_tile, V)
    tgt_emb = jnp.dot(tgt_oh, in_tbl_ref[...].astype(jnp.float32),
                      preferred_element_type=jnp.float32)        # (b_tile, D)

    out_tbl = out_tbl_ref[...].astype(jnp.float32)

    pos_part = jnp.zeros((1, 1), jnp.float32)
    neg_part = jnp.zeros((1, 1), jnp.float32)
    # Column 0 = context word (positive); columns 1..K = negative samples.
    for c in range(1 + k_neg):
        oh = (cn_ids_ref[:, c:c + 1] == iota_v).astype(jnp.float32)
        emb = jnp.dot(oh, out_tbl, preferred_element_type=jnp.float32)
        score = jnp.sum(tgt_emb * emb, axis=-1, keepdims=True)   # (b_tile, 1)
        if c == 0:
            pos_part = pos_part + jnp.sum(mask * _log_sigmoid(score),
                                          axis=(0, 1), keepdims=True)
        else:
            neg_part = neg_part + jnp.sum(mask * _log_sigmoid(-score),
                                          axis=(0, 1), keepdims=True)

    pos_ref[...] += -pos_part / b_true
    neg_ref[...] += -neg_part / (b_true * k_neg)


def _pick_batch_tile(batch, vocab):
    b_tile = 256
    while b_tile > 8 and (b_tile > _round_up(batch, 8)
                          or b_tile * vocab * 4 > _ONE_HOT_BYTES):
        b_tile //= 2
    return max(8, b_tile)


def skipgram_nsg_forward_fused(target_ids, context_ids, negative_ids,
                               input_table, output_table):
    """Single fused pallas_call: gathers on the MXU + accumulated losses."""
    (B,) = target_ids.shape
    _, K = negative_ids.shape
    V, D = input_table.shape

    tgt = jnp.clip(target_ids.astype(jnp.int32), 0, V - 1)
    ctx = jnp.clip(context_ids.astype(jnp.int32), 0, V - 1)
    neg = jnp.clip(negative_ids.astype(jnp.int32), 0, V - 1)

    b_tile = _pick_batch_tile(B, V)
    b_pad = _round_up(B, b_tile)
    pad = b_pad - B
    if pad:
        tgt = jnp.concatenate([tgt, jnp.zeros((pad,), jnp.int32)])
        ctx = jnp.concatenate([ctx, jnp.zeros((pad,), jnp.int32)])
        neg = jnp.concatenate([neg, jnp.zeros((pad, K), jnp.int32)], axis=0)

    cn_ids = jnp.concatenate([ctx[:, None], neg], axis=1)        # (b_pad, 1+K)
    tgt_ids = tgt[:, None]                                       # (b_pad, 1)

    kernel = functools.partial(_fused_nsg_kernel, b_true=B, k_neg=K)
    pos, negl = pl.pallas_call(
        kernel,
        grid=(b_pad // b_tile,),
        in_specs=[
            pl.BlockSpec((b_tile, 1), lambda i: (i, 0)),
            pl.BlockSpec((b_tile, 1 + K), lambda i: (i, 0)),
            pl.BlockSpec((V, D), lambda i: (0, 0)),   # tables stay resident
            pl.BlockSpec((V, D), lambda i: (0, 0)),
        ],
        out_specs=(pl.BlockSpec((1, 1), lambda i: (0, 0)),
                   pl.BlockSpec((1, 1), lambda i: (0, 0))),
        out_shape=(jax.ShapeDtypeStruct((1, 1), jnp.float32),
                   jax.ShapeDtypeStruct((1, 1), jnp.float32)),
        compiler_params=pltpu.CompilerParams(
            dimension_semantics=("arbitrary",),       # loss accumulated across tiles
            vmem_limit_bytes=_VMEM_LIMIT),
    )(tgt_ids, cn_ids, input_table, output_table)
    return pos[0, 0], negl[0, 0]


# ---------------------------------------------------------------------------
# Standalone embedding gather: out[r, :] = table[ids[r], :]
# ---------------------------------------------------------------------------

def _gather_onehot_kernel(ids_ref, table_ref, out_ref):
    b_tile = ids_ref.shape[0]
    vocab = table_ref.shape[0]
    iota_v = jax.lax.broadcasted_iota(jnp.int32, (b_tile, vocab), 1)
    oh = (ids_ref[...] == iota_v).astype(jnp.float32)
    out_ref[...] = jnp.dot(oh, table_ref[...].astype(jnp.float32),
                           preferred_element_type=jnp.float32
                           ).astype(out_ref.dtype)


def _gather_dma_kernel(ids_ref, table_hbm, out_ref, sem):
    """Large-table fallback: one row DMA per output row, all in flight."""
    i = pl.program_id(0)
    b_tile = out_ref.shape[0]
    base = i * b_tile
    copies = []
    for r in range(b_tile):
        idx = ids_ref[base + r]
        cp = pltpu.make_async_copy(
            table_hbm.at[pl.ds(idx, 1), :],
            out_ref.at[pl.ds(r, 1), :],
            sem.at[r])
        cp.start()
        copies.append(cp)
    for cp in copies:            # wait on the *same* descriptors we started
        cp.wait()


def embedding_gather(ids, table, *, force_dma=False):
    """nn.Embedding forward: out[i] = table[ids[i]]."""
    ids = jnp.clip(ids.astype(jnp.int32), 0, table.shape[0] - 1)
    (B,) = ids.shape
    V, D = table.shape
    table_bytes = V * D * table.dtype.itemsize
    use_resident = (not force_dma) and (table_bytes <= _RESIDENT_TABLE_BYTES)

    if use_resident:
        b_tile = _pick_batch_tile(B, V)
        b_pad = _round_up(B, b_tile)
        if b_pad != B:
            ids = jnp.concatenate([ids, jnp.zeros((b_pad - B,), jnp.int32)])
        out = pl.pallas_call(
            _gather_onehot_kernel,
            grid=(b_pad // b_tile,),
            in_specs=[pl.BlockSpec((b_tile, 1), lambda i: (i, 0)),
                      pl.BlockSpec((V, D), lambda i: (0, 0))],
            out_specs=pl.BlockSpec((b_tile, D), lambda i: (i, 0)),
            out_shape=jax.ShapeDtypeStruct((b_pad, D), table.dtype),
            compiler_params=pltpu.CompilerParams(
                dimension_semantics=("parallel",),
                vmem_limit_bytes=_VMEM_LIMIT),
        )(ids[:, None], table)
        return out[:B]

    # Huge-table path: table stays in HBM, gather with in-flight row DMAs.
    # TODO(synk): dedupe/sort ids per tile and double-buffer a VMEM scratch so
    # next-tile DMAs overlap this tile's writeback (descriptor-issue bound).
    b_tile = min(128, _round_up(B, 8))
    b_pad = _round_up(B, b_tile)
    if b_pad != B:
        ids = jnp.concatenate([ids, jnp.zeros((b_pad - B,), jnp.int32)])
    out = pl.pallas_call(
        _gather_dma_kernel,
        out_shape=jax.ShapeDtypeStruct((b_pad, D), table.dtype),
        grid_spec=pltpu.PrefetchScalarGridSpec(
            num_scalar_prefetch=1,                    # ids land in SMEM
            grid=(b_pad // b_tile,),
            in_specs=[pl.BlockSpec(memory_space=pl.ANY)],
            out_specs=pl.BlockSpec((b_tile, D), lambda i, ids_ref: (i, 0)),
            scratch_shapes=[pltpu.SemaphoreType.DMA((b_tile,))]),
        compiler_params=pltpu.CompilerParams(
            dimension_semantics=("parallel",),
            vmem_limit_bytes=_VMEM_LIMIT),
    )(ids, table)
    return out[:B]


# ---------------------------------------------------------------------------
# Loss-only kernel (fallback when tables don't fit in VMEM): batch-tiled,
# accumulating, padding-masked.
# ---------------------------------------------------------------------------

def _nsg_loss_kernel(tgt_ref, ctx_ref, neg_ref, pos_ref, negl_ref, *,
                     b_true, k_neg):
    i = pl.program_id(0)

    @pl.when(i == 0)
    def _init():
        pos_ref[...] = jnp.zeros_like(pos_ref)
        negl_ref[...] = jnp.zeros_like(negl_ref)

    b_tile, d = tgt_ref.shape
    row = jax.lax.broadcasted_iota(jnp.int32, (b_tile, 1), 0) + i * b_tile
    mask = (row < b_true).astype(jnp.float32)

    tgt = tgt_ref[...].astype(jnp.float32)
    ctx = ctx_ref[...].astype(jnp.float32)
    pos_s = jnp.sum(tgt * ctx, axis=-1, keepdims=True)
    pos_ref[...] += -jnp.sum(mask * _log_sigmoid(pos_s),
                             axis=(0, 1), keepdims=True) / b_true

    neg_part = jnp.zeros((1, 1), jnp.float32)
    # Unrolled k-loop: no (b_tile, K, D) broadcast temporary; tgt reused.
    for k in range(k_neg):
        nk = neg_ref[:, k:k + 1, :].reshape(b_tile, d).astype(jnp.float32)
        s = jnp.sum(tgt * nk, axis=-1, keepdims=True)
        neg_part = neg_part + jnp.sum(mask * _log_sigmoid(-s),
                                      axis=(0, 1), keepdims=True)
    negl_ref[...] += -neg_part / (b_true * k_neg)


def skipgram_negative_sampling_losses(tgt_emb, ctx_emb, neg_emb):
    B, D = tgt_emb.shape
    _, K, _ = neg_emb.shape
    # Tile batch so double-buffered (tgt+ctx+neg) blocks stay ~<= 8 MiB.
    budget = (8 * 1024 * 1024) // (2 * (2 + K) * D * 4)
    budget = max(8, budget // 8 * 8)
    b_tile = max(8, min(512, budget, _round_up(B, 8)))
    b_pad = _round_up(B, b_tile)
    pad = b_pad - B
    if pad:
        tgt_emb = jnp.concatenate([tgt_emb, jnp.zeros((pad, D), tgt_emb.dtype)])
        ctx_emb = jnp.concatenate([ctx_emb, jnp.zeros((pad, D), ctx_emb.dtype)])
        neg_emb = jnp.concatenate(
            [neg_emb, jnp.zeros((pad, K, D), neg_emb.dtype)], axis=0)

    kernel = functools.partial(_nsg_loss_kernel, b_true=B, k_neg=K)
    pos, negl = pl.pallas_call(
        kernel,
        grid=(b_pad // b_tile,),
        in_specs=[pl.BlockSpec((b_tile, D), lambda i: (i, 0)),
                  pl.BlockSpec((b_tile, D), lambda i: (i, 0)),
                  pl.BlockSpec((b_tile, K, D), lambda i: (i, 0, 0))],
        out_specs=(pl.BlockSpec((1, 1), lambda i: (0, 0)),
                   pl.BlockSpec((1, 1), lambda i: (0, 0))),
        out_shape=(jax.ShapeDtypeStruct((1, 1), jnp.float32),
                   jax.ShapeDtypeStruct((1, 1), jnp.float32)),
        compiler_params=pltpu.CompilerParams(
            dimension_semantics=("arbitrary",),
            vmem_limit_bytes=_VMEM_LIMIT),
    )(tgt_emb, ctx_emb, neg_emb)
    return pos[0, 0], negl[0, 0]


# ---------------------------------------------------------------------------
# Model wrappers (forward-pass parity with the PyTorch modules)
# ---------------------------------------------------------------------------

class SkipGramModelPallas:
    """JAX/Pallas port of SkipGramModel (forward = input-embedding lookup)."""

    def __init__(self, vocab_size, embedding_dim, window_size=5, key=None):
        self.vocab_size = vocab_size
        self.embedding_dim = embedding_dim
        self.window_size = window_size
        if key is None:
            key = jax.random.PRNGKey(0)
        bound = 0.5 / embedding_dim
        # nn.init.uniform_(input_embeddings.weight, -0.5/D, 0.5/D)
        self.input_embeddings = jax.random.uniform(
            key, (vocab_size, embedding_dim), dtype=jnp.float32,
            minval=-bound, maxval=bound)
        # nn.init.zeros_(output_embeddings.weight)
        self.output_embeddings = jnp.zeros((vocab_size, embedding_dim),
                                           dtype=jnp.float32)

    def __call__(self, target_words):
        return embedding_gather(target_words, self.input_embeddings)

    def output_lookup(self, words):
        return embedding_gather(words, self.output_embeddings)

    def get_input_embeddings(self):
        return self.input_embeddings

    def get_output_embeddings(self):
        return self.output_embeddings


class SkipGramNegativeSamplingPallas:
    """JAX/Pallas port of SkipGramNegativeSampling (forward pass)."""

    def __init__(self, vocab_size, embedding_dim, num_negative_samples=5,
                 key=None):
        self.vocab_size = vocab_size
        self.embedding_dim = embedding_dim
        self.num_negative_samples = num_negative_samples
        self.skipgram = SkipGramModelPallas(vocab_size, embedding_dim, key=key)
        self.negative_sampling_table = None

    def __call__(self, target_words, context_words, negative_words):
        in_tbl = self.skipgram.input_embeddings
        out_tbl = self.skipgram.output_embeddings
        tables_bytes = ((in_tbl.size + out_tbl.size) * in_tbl.dtype.itemsize)
        if tables_bytes <= _RESIDENT_TABLE_BYTES:
            # Fast path: gathers + losses fused into one pallas_call.
            return skipgram_nsg_forward_fused(
                target_words, context_words, negative_words, in_tbl, out_tbl)
        # Huge-vocab fallback: DMA gathers (ctx+neg merged) + tiled loss kernel.
        b, k = negative_words.shape
        tgt = embedding_gather(target_words, in_tbl)
        cn_ids = jnp.concatenate(
            [context_words.reshape(b, 1), negative_words], axis=1).reshape(-1)
        cn = embedding_gather(cn_ids, out_tbl).reshape(b, 1 + k, -1)
        return skipgram_negative_sampling_losses(tgt, cn[:, 0, :], cn[:, 1:, :])

    def set_negative_sampling_table(self, table):
        self.negative_sampling_table = table

    def get_negative_samples(self, batch_size, key):
        # Host-side sampling utility (not part of forward); plain JAX RNG.
        if self.negative_sampling_table is None:
            return jax.random.randint(
                key, (batch_size, self.num_negative_samples), 0,
                self.vocab_size, dtype=jnp.int32)
        idx = jax.random.randint(
            key, (batch_size, self.num_negative_samples), 0,
            len(self.negative_sampling_table), dtype=jnp.int32)
        return jnp.asarray(self.negative_sampling_table)[idx]


if __name__ == "__main__":
    key = jax.random.PRNGKey(0)
    k_emb, k_out, k_tgt, k_ctx, k_neg = jax.random.split(key, 5)

    vocab_size = 256
    embedding_dim = 128
    batch = 24          # not a multiple of the batch tile -> exercises masking
    num_neg = 5

    model = SkipGramNegativeSamplingPallas(
        vocab_size, embedding_dim, num_negative_samples=num_neg, key=k_emb)
    # PyTorch init zeroes the output table; use random weights for the test so
    # the gathers / dot products are actually exercised (semantics unchanged).
    model.skipgram.output_embeddings = jax.random.uniform(
        k_out, (vocab_size, embedding_dim), dtype=jnp.float32,
        minval=-0.1, maxval=0.1)

    target_words = jax.random.randint(k_tgt, (batch,), 0, vocab_size,
                                      dtype=jnp.int32)
    context_words = jax.random.randint(k_ctx, (batch,), 0, vocab_size,
                                       dtype=jnp.int32)
    negative_words = jax.random.randint(k_neg, (batch, num_neg), 0, vocab_size,
                                        dtype=jnp.int32)

    emb = model.skipgram.input_embeddings
    out_emb = model.skipgram.output_embeddings

    # 1) gather kernel vs jnp.take -- resident one-hot MXU path
    got = jax.block_until_ready(embedding_gather(target_words, emb))
    ref = jnp.take(emb, target_words, axis=0)
    assert got.shape == (batch, embedding_dim)
    assert jnp.allclose(got, ref, rtol=5e-3, atol=1e-7), "one-hot gather mismatch"

    # 2) gather kernel vs jnp.take -- manual HBM row-DMA path (large-vocab fallback)
    got_dma = jax.block_until_ready(
        embedding_gather(target_words, emb, force_dma=True))
    assert jnp.allclose(got_dma, ref), "dma-path gather mismatch"

    # 3) full fused SkipGramNegativeSampling forward vs pure-JAX reference
    pos_loss, neg_loss = model(target_words, context_words, negative_words)
    pos_loss, neg_loss = jax.block_until_ready((pos_loss, neg_loss))

    tgt_r = emb[target_words]
    ctx_r = out_emb[context_words]
    neg_r = out_emb[negative_words]
    pos_ref = -jnp.mean(jax.nn.log_sigmoid(jnp.sum(tgt_r * ctx_r, axis=1)))
    neg_ref = -jnp.mean(
        jax.nn.log_sigmoid(-jnp.sum(tgt_r[:, None, :] * neg_r, axis=2)))
    assert jnp.allclose(pos_loss, pos_ref, rtol=1e-4, atol=1e-5), \
        "fused positive loss mismatch"
    assert jnp.allclose(neg_loss, neg_ref, rtol=1e-4, atol=1e-5), \
        "fused negative loss mismatch"

    # 4) tiled loss-only fallback kernel vs the same reference
    pos2, neg2 = skipgram_negative_sampling_losses(tgt_r, ctx_r, neg_r)
    pos2, neg2 = jax.block_until_ready((pos2, neg2))
    assert jnp.allclose(pos2, pos_ref, rtol=1e-5, atol=1e-6), \
        "tiled positive loss mismatch"
    assert jnp.allclose(neg2, neg_ref, rtol=1e-5, atol=1e-6), \
        "tiled negative loss mismatch"

    print("KERNEL_OK")
</pallas_src>

<mosaic_0001>
module attributes {stable_mosaic.version = 11 : i64} {
  func.func @_gather_onehot_kernel(%arg0: i32, %arg1: memref<16x1xi32, #tpu.memory_space<vmem>>, %arg2: memref<256x128xf32, #tpu.memory_space<vmem>>, %arg3: memref<16x128xf32, #tpu.memory_space<vmem>>) attributes {dimension_semantics = [#tpu.dimension_semantics<parallel>], iteration_bounds = array<i64: 2>, scalar_prefetch = 0 : i64, scratch_operands = 0 : i64, tpu.core_type = #tpu.core_type<tc>, window_params = [{transform_indices = @transform_0, window_bounds = array<i64: 16, 1>}, {pipeline_mode = #tpu.pipeline_mode<synchronous>, transform_indices = @transform_1, window_bounds = array<i64: 256, 128>}, {transform_indices = @transform_2, window_bounds = array<i64: 16, 128>}]} {
    %0 = tpu.iota {dimensions = array<i32: 1>} : vector<16x256xi32>
    %c0 = arith.constant 0 : index
    %c0_0 = arith.constant 0 : index
    %1 = vector.load %arg1[%c0, %c0_0] : memref<16x1xi32, #tpu.memory_space<vmem>>, vector<16x1xi32>
    %2 = vector.broadcast %1 : vector<16x1xi32> to vector<16x256xi32>
    %3 = arith.cmpi eq, %2, %0 : vector<16x256xi32>
    %4 = arith.extui %3 : vector<16x256xi1> to vector<16x256xi32>
    %5 = arith.sitofp %4 : vector<16x256xi32> to vector<16x256xf32>
    %c0_1 = arith.constant 0 : index
    %c0_2 = arith.constant 0 : index
    %6 = vector.load %arg2[%c0_1, %c0_2] : memref<256x128xf32, #tpu.memory_space<vmem>>, vector<256x128xf32>
    %cst = arith.constant dense<0.000000e+00> : vector<16x128xf32>
    %7 = tpu.matmul %5, %6, %cst {dimension_numbers = #tpu.dot_dimension_numbers<[1], [0], [0], [1], [0, 0, 1, 1], [], []>} : vector<16x256xf32>, vector<256x128xf32>, vector<16x128xf32> -> vector<16x128xf32>
    %c0_3 = arith.constant 0 : index
    %c0_4 = arith.constant 0 : index
    %8 = vector.load %arg3[%c0_3, %c0_4] : memref<16x128xf32, #tpu.memory_space<vmem>>, vector<16x128xf32>
    tpu.vector_store %arg3[%c0_3, %c0_4], %7 {strides = array<i32>} : memref<16x128xf32, #tpu.memory_space<vmem>>, vector<16x128xf32>,
    return
  }
  func.func @transform_0(%arg0: i32) -> (i32, i32) {
    %c0_i32 = arith.constant 0 : i32
    %c0_i32_0 = arith.constant 0 : i32
    return %arg0, %c0_i32 : i32, i32
  }
  func.func @transform_1(%arg0: i32) -> (i32, i32) {
    %c0_i32 = arith.constant 0 : i32
    %c0_i32_0 = arith.constant 0 : i32
    %c0_i32_1 = arith.constant 0 : i32
    return %c0_i32, %c0_i32_0 : i32, i32
  }
  func.func @transform_2(%arg0: i32) -> (i32, i32) {
    %c0_i32 = arith.constant 0 : i32
    %c0_i32_0 = arith.constant 0 : i32
    return %arg0, %c0_i32 : i32, i32
  }
}

</mosaic_0001>

<bundles_post_ra>
// kernel: tpu_custom_call.1
= control target key start
LH: loop header
LB: loop body
LE: loop exit
PB: predicated region body
PF: predicated region fallthrough
CT: control target
= control target key end

     0   :  { %7 = vsyncpa [#allocation3], 0  ;;  %s802_s0 = inlined_call_operand.vmem [shape: s32[32,1], index: 0, kind: input, shape index: {}]   ;;  %s803_s1 = inlined_call_operand.hbm [shape: f32[256,128], index: 1, kind: input, shape index: {}]   ;;  %s804_s2 = inlined_call_operand.hbm [shape: f32[32,128], index: 2, kind: output, shape index: {}]  }
   0x1   :  { %8 = vsyncpa [#allocation4], 0 }
   0x2   :  { %10 = vsyncpa [#allocation4 + $0x1], 0  ;;  %s665_s9 = smov 0   ;;  %s667_s10 = smov 0  }
   0x3   :  { %s669_s11 = smov 0   ;;  %s671_s12 = smov 0  }
   0x4 LB: > { %s686_s13 = sadd.s32 4294967295, %s640_s12   ;;  %s380_s14 = sadd.s32 4294967294, %s640_s12   ;;  %s640_s12 = sphi %s671_s12, %s820_s12   ;;  %s636_s11 = sphi %s669_s11, %s819_s11   ;;  %s632_s10 = sphi %s667_s10, %s818_s10   ;;  %s628_s9 = sphi %s665_s9, %s817_s9  }
   0x5   : > { %s690_s15 = sadd.s32 1, %s640_s12   ;;  %s70_s16 = sadd.s32 1, %s636_s11 }
   0x6   : > { %s67_s17 = ssub.s32 %s640_s12, %s690_s15  ;;  %p80_p0 = scmp.ne.s32.totalorder %s636_s11, %s632_s10 }
   0x7   : > { %p68_p1 = scmp.eq.s32.totalorder %s67_s17, 0  ;;  %p81_p2 = scmp.eq.s32.totalorder %s686_s13, 1 }
   0x8   : > { %p86_p3 = scmp.ne.s32.totalorder %s632_s10, %s628_s9  ;;  %p87_p4 = scmp.eq.s32.totalorder %s380_s14, 1 }
   0x9   : > { %s701_s18 = scalar_select %p68_p1, %s636_s11, %s70_s16  }
   0xa   : > { %p703_p5 = por %p81_p2, %p80_p0  ;;  %p707_p6 = por %p87_p4, %p86_p3 }
   0xb   : > { %p381_p7 = scmp.ge.s32.totalorder %s640_s12, 1  ;;  %p94_p8 = scmp.lt.s32.totalorder %s640_s12, 3 }
   0xc   : > { %s808_s19 = scalar_select %p703_p5, 1, 0 }
   0xd   : > { %s809_s20 = scalar_select %p707_p6, 1, 0 }
   0xe   : > { %p805_p9 = scmp.eq.s32.totalorder %s686_s13, 0  ;;  %p714_p10 = pnand %p381_p7, %p94_p8 }
   0xf   : > { %s642_s22 = smov [#allocation2]   ;;  %s546_s27 = scalar_lea.hbm %s803_s1, 4096 }
  0x10   : > { %s810_s21 = scalar_select %p714_p10, 1, 0 }
  0x11   : > { %s106_s23 = sshll.u32 %s642_s22, 4  ;;  %p495_p11 = pneg %p714_p10  ;;  %s107_s23 = int_to_ptr.vmem [resolvable:$true] %s106_s23 }
  0x12   : > { %p547_p13 = scmp.ne.s32.totalorder %s803_s1, %s546_s27  ;;  %p553_p3 = scmp.lt.u32.totalorder %s546_s27, %s803_s1 }
  0x13   : > { %p722_p12 = pnand %p805_p9, %p495_p11 }
  0x15   : > { %p548_p0 = pneg %p722_p12 }
  0x17   : > { %p549_p1 = pnand %p548_p0, %p547_p13 }
  0x19   : > { %p550_p2 = pneg %p549_p1 }
  0x1b   : > { %p555_p4 = pnand %p553_p3, %p550_p2 }
  0x1d   : > { %558 = shalt.err (!%p555_p4)
}
  0x1e   : > { %s559_s4 = scalar_lea.vmem %s107_s23, 4096  ;;  %p567_p9 = scmp.lt.s32.totalorder %s107_s23, %s107_s23 }
  0x1f   : > { %p560_p7 = scmp.ne.s32.totalorder %s107_s23, %s559_s4  ;;  %p568_p6 = scmp.lt.s32.totalorder %s559_s4, %s559_s4 }
  0x21   : > { %p562_p8 = pnand %p560_p7, %p548_p0  ;;  %p569_p5 = por %p568_p6, %p567_p9 }
  0x23   : > { %p563_p11 = pneg %p562_p8 }
  0x25   : > { %p570_p10 = pnand %p569_p5, %p563_p11 }
  0x27   : > { %573 = shalt.err (!%p570_p10)
}
  0x28   : > { %s643_s5 = smov 128   ;;  %s644_s6 = smov 8  }
  0x29   : > { %498 = dma.hbm_to_vmem [thread:$0]  (!%p722_p12), %s803_s1, 4096, %s107_s23, [#allocation3], %s643_s5, %s643_s5, %s644_s6  }
  0x2a   : > { %p812_p13 = scmp.ne.s32.totalorder %s810_s21, 0 }
  0x2b   : > { %p813_p1 = scmp.eq.s32.totalorder (!%p812_p13), %s686_s13, 0 }
  0x2c   : > { %131 = sbr.rel (%p812_p13) target bundleno = 423 (0x1a7), region = 28 }
  0x33   : > { %619 = dma.done.wait (%p813_p1), [#allocation3], 4096   ;;  %p814_p0 = pmov %p813_p1 }
  0x34   : > { %s387_s14 = sshll.u32 %s686_s13, 1  ;;  %v645_v0 = vmov 0   ;;  %v199_v3 = vld [vmem:[#allocation2 + $0x80] sm:$0xff]  ;;  %v200_v4 = vld [vmem:[#allocation2 + $0x88] sm:$0xff]  ;;  %v201_v9 = vld [vmem:[#allocation2 + $0x90] sm:$0xff]  ;;  %v160_v51 = vlaneseq  ;;  %v646_v55 = vmov 1.0  }
  0x35   : > { %621 = vsyncadd (%p814_p0), [#allocation3], 4294963200  ;;  %545 = vset.pattern.permute.xlu0 %v645_v0  ;;  %p154_p5 = scmp.lt.s32.totalorder %s387_s14, 3  ;;  %v183_v5 = vld [vmem:[#allocation2] sm:$0xff]  ;;  %v184_v6 = vld [vmem:[#allocation2 + $0x8] sm:$0xff]  ;;  %v441_v7 = vpack.c.bf16 %v200_v4, %v199_v3  ;;  %s150_s21 = sand.u32 1, %s632_s10  }
  0x36   : > { %v443_v8 = vpack.c.bf16 %v184_v6, %v183_v5  ;;  %v202_v10 = vld [vmem:[#allocation2 + $0x98] sm:$0xff]  ;;  %v185_v11 = vld [vmem:[#allocation2 + $0x10] sm:$0xff]  ;;  %v203_v14 = vld [vmem:[#allocation2 + $0xa0] sm:$0xff]  ;;  %v161_v52 = vand.u32 127, %v160_v51  ;;  %s386_s24 = sshll.u32 %s150_s21, 4  ;;  %s402_s27 = sshll.u32 %s686_s13, 8 }
  0x37   : > { %s822_s14 = smov (!%p154_p5, %s387_s14), 3  ;;  %v445_v12 = vpack.c.bf16 %v202_v10, %v201_v9  ;;  %v186_v13 = vld [vmem:[#allocation2 + $0x18] sm:$0xff]  ;;  %v204_v15 = vld [vmem:[#allocation2 + $0xa8] sm:$0xff]  ;;  %442 = vmatprep.subr.bf16.mxu0 %v441_v7  ;;  %473 = vmatprep.subr.bf16.mxu1 %v441_v7  ;;  %v187_v18 = vld [vmem:[#allocation2 + $0x20] sm:$0xff]  ;;  %s152_s25 = scalar_lea.vmem [#allocation5], %s386_s24 }
  0x38   : > { %s388_s16 = sshll.u32 %s822_s14, 3  ;;  %444 = vmatpush3.bf16.msra.mxu0 %v443_v8  ;;  %v447_v16 = vpack.c.bf16 %v186_v13, %v185_v11  ;;  %481 = vmatpush3.bf16.msra.mxu1 %v443_v8  ;;  %v449_v17 = vpack.c.bf16 %v204_v15, %v203_v14  ;;  %v188_v19 = vld [vmem:[#allocation2 + $0x28] sm:$0xff]  ;;  %v205_v20 = vld [vmem:[#allocation2 + $0xb0] sm:$0xff]  ;;  %v206_v21 = vld [vmem:[#allocation2 + $0xb8] sm:$0xff]  ;;  %v162_v53 = vadd.s32 128, %v161_v52  ;;  %s306_s26 = sshll.u32 %s152_s25, 4  ;;  %s754_s26 = int_to_ptr.vmem [resolvable:$true] %s306_s26 }
  0x39   : > { %s157_s23 = scalar_lea.vmem %s802_s0, %s388_s16  ;;  %446 = vmatprep.subr.bf16.mxu0 %v445_v12  ;;  %474 = vmatprep.subr.bf16.mxu1 %v445_v12  ;;  %v451_v22 = vpack.c.bf16 %v188_v19, %v187_v18  ;;  %v453_v23 = vpack.c.bf16 %v206_v21, %v205_v20  ;;  %v189_v24 = vld [vmem:[#allocation2 + $0x30] sm:$0xff]  ;;  %v190_v25 = vld [vmem:[#allocation2 + $0x38] sm:$0xff]  ;;  %v207_v26 = vld [vmem:[#allocation2 + $0xc0] sm:$0xff]  ;;  %s759_s30 = scalar_lea.hbm %s804_s2, %s402_s27 }
  0x3a   : > { %v163_v1 = vld [vmem:[%s157_s23] sm:$0xff]  ;;  %v164_v2 = vld [vmem:[%s157_s23 + $0x8] sm:$0xff]  ;;  %v455_v28 = vpack.c.bf16 %v190_v25, %v189_v24  ;;  %v209_v32 = vld [vmem:[#allocation2 + $0xd0] sm:$0xff]  ;;  %s761_s3 = scalar_lea.sflag [#allocation4], %s150_s21  ;;  %s574_s4 = scalar_lea.vmem %s754_s26, 256 }
  0x3b   : > { %166 = vperm.xlu0 %545, %v163_v1   ;;  %v208_v27 = vld [vmem:[#allocation2 + $0xc8] sm:$0xff]  ;;  %v191_v30 = vld [vmem:[#allocation2 + $0x40] sm:$0xff]  ;;  %v210_v33 = vld [vmem:[#allocation2 + $0xd8] sm:$0xff]  ;;  %p575_p6 = scmp.ne.s32.totalorder %s754_s26, %s574_s4  ;;  %p815_p9 = scmp.ne.s32.totalorder %s808_s19, 0 }
  0x3c   : > { %448 = vmatpush3.bf16.msra.mxu0 %v447_v16  ;;  %482 = vmatpush3.bf16.msra.mxu1 %v447_v16  ;;  %v457_v29 = vpack.c.bf16 %v208_v27, %v207_v26  ;;  %v192_v31 = vld [vmem:[#allocation2 + $0x48] sm:$0xff]  ;;  %v461_v35 = vpack.c.bf16 %v210_v33, %v209_v32  ;;  %v193_v36 = vld [vmem:[#allocation2 + $0x50] sm:$0xff]  ;;  %v194_v37 = vld [vmem:[#allocation2 + $0x58] sm:$0xff]  ;;  %s647_s13 = smov [#allocation5]  }
  0x3d   : > { %450 = vmatprep.subr.bf16.mxu0 %v449_v17  ;;  %475 = vmatprep.subr.bf16.mxu1 %v449_v17  ;;  %v459_v34 = vpack.c.bf16 %v192_v31, %v191_v30  ;;  %v211_v38 = vld [vmem:[#allocation2 + $0xe0] sm:$0xff]  ;;  %v212_v39 = vld [vmem:[#allocation2 + $0xe8] sm:$0xff]  ;;  %v463_v40 = vpack.c.bf16 %v194_v37, %v193_v36  ;;  %v213_v44 = vld [vmem:[#allocation2 + $0xf0] sm:$0xff]  ;;  %p576_p10 = pnand %p575_p6, %p815_p9  ;;  %s578_s5 = sshll.u32 %s647_s13, 4  ;;  %s579_s5 = int_to_ptr.vmem [resolvable:$false] %s578_s5 }
  0x3e   : > { %v465_v41 = vpack.c.bf16 %v212_v39, %v211_v38  ;;  %v195_v42 = vld [vmem:[#allocation2 + $0x60] sm:$0xff]  ;;  %v196_v43 = vld [vmem:[#allocation2 + $0x68] sm:$0xff]  ;;  %v214_v45 = vld [vmem:[#allocation2 + $0xf8] sm:$0xff]  ;;  %s580_s6 = scalar_lea.vmem %s579_s5, 512  ;;  %p581_p2 = scmp.lt.s32.totalorder %s754_s26, %s579_s5 }
  0x3f   : > { %169 = vperm.xlu0 %545, %v164_v2   ;;  %v467_v46 = vpack.c.bf16 %v196_v43, %v195_v42  ;;  %v469_v47 = vpack.c.bf16 %v214_v45, %v213_v44  ;;  %v197_v48 = vld [vmem:[#allocation2 + $0x70] sm:$0xff]  ;;  %v198_v49 = vld [vmem:[#allocation2 + $0x78] sm:$0xff]  ;;  %p577_p12 = pneg %p576_p10  ;;  %p582_p3 = scmp.lt.s32.totalorder %s580_s6, %s574_s4 }
  0x40   : > { %452 = vmatpush3.bf16.msra.mxu0 %v451_v22  ;;  %483 = vmatpush3.bf16.msra.mxu1 %v451_v22  ;;  %v471_v50 = vpack.c.bf16 %v198_v49, %v197_v48 }
  0x41   : > { %454 = vmatprep.subr.bf16.mxu0 %v453_v23  ;;  %476 = vmatprep.subr.bf16.mxu1 %v453_v23  ;;  %p583_p4 = por %p582_p3, %p581_p2 }
  0x43   : > { %p584_p7 = pnand %p583_p4, %p577_p12 }
  0x44   : > { %456 = vmatpush3.bf16.msra.mxu0 %v455_v28  ;;  %484 = vmatpush3.bf16.msra.mxu1 %v455_v28 }
  0x45   : > { %458 = vmatprep.subr.bf16.mxu0 %v457_v29  ;;  %477 = vmatprep.subr.bf16.mxu1 %v457_v29 }
  0x48   : > { %460 = vmatpush3.bf16.msra.mxu0 %v459_v34  ;;  %485 = vmatpush3.bf16.msra.mxu1 %v459_v34 }
  0x49   : > { %462 = vmatprep.subr.bf16.mxu0 %v461_v35  ;;  %478 = vmatprep.subr.bf16.mxu1 %v461_v35 }
  0x4c   : > { %464 = vmatpush3.bf16.msra.mxu0 %v463_v40  ;;  %486 = vmatpush3.bf16.msra.mxu1 %v463_v40 }
  0x4d   : > { %466 = vmatprep.subr.bf16.mxu0 %v465_v41  ;;  %479 = vmatprep.subr.bf16.mxu1 %v465_v41 }
  0x50   : > { %468 = vmatpush3.bf16.msra.mxu0 %v467_v46  ;;  %487 = vmatpush3.bf16.msra.mxu1 %v467_v46 }
  0x51   : > { %470 = vmatprep.subr.bf16.mxu0 %v469_v47  ;;  %480 = vmatprep.subr.bf16.mxu1 %v469_v47 }
  0x54   : > { %472 = vmatpush3.bf16.msra.mxu0 %v471_v50  ;;  %488 = vmatpush3.bf16.msra.mxu1 %v471_v50 }
  0xba   : > { %v167_v54 = vpop.permute.xlu0 %166 }
  0xbb   : > { %vm171_vm0 = vcmp.eq.s32.totalorder %v167_v54, %v161_v52  ;;  %vm172_vm1 = vcmp.eq.s32.totalorder %v167_v54, %v162_v53 }
  0xbc   : > { %393 = vmatprep.mubr.msk.f32.mxu0 %vm172_vm1, %v646_v55 }
  0xbd   : > { %394 = vmatmul.mubr.msk.f32.vlgmr.msra.gmra.mrb[0].mxu0 %vm171_vm0, %v646_v55 }
  0xbe   : > { %v170_v56 = vpop.permute.xlu0 %169 }
  0xbf   : > { %vm173_vm2 = vcmp.eq.s32.totalorder %v170_v56, %v161_v52  ;;  %vm174_vm3 = vcmp.eq.s32.totalorder %v170_v56, %v162_v53 }
  0xc0   : > { %395 = vmatprep.mubr.msk.f32.mxu1 %vm174_vm3, %v646_v55 }
  0xc1   : > { %396 = vmatmul.mubr.msk.f32.vlgmr.msra.gmra.mrb[0].mxu1 %vm173_vm2, %v646_v55 }
 0x190   : > { %v435_v57 = vpop.f32.mrb[0].mxu0 }
 0x191   : > { %v436_v58 = vpop.f32.mrb[1].mxu0 }
 0x192   : > { %v437_v59 = vadd.f32 %v436_v58, %v435_v57 }
 0x194   : > { %290 = vst [vmem:[%s152_s25] sm:$0xff] %v437_v59  ;;  %v438_v60 = vpop.f32.mrb[0].mxu1 }
 0x195   : > { %v439_v61 = vpop.f32.mrb[1].mxu1 }
 0x196   : > { %v440_v62 = vadd.f32 %v439_v61, %v438_v60 }
 0x198   : > { %291 = vst [vmem:[%s152_s25 + $0x8] sm:$0xff] %v440_v62 }
 0x199   : > { %587 = shalt.err (!%p584_p7)
}
 0x19a   : > { %s588_s7 = scalar_lea.hbm %s759_s30, 256  ;;  %s592_s16 = scalar_lea.hbm %s804_s2, 512 }
 0x19b   : > { %p589_p8 = scmp.ne.s32.totalorder %s759_s30, %s588_s7  ;;  %p593_p1 = scmp.lt.u32.totalorder %s759_s30, %s804_s2 }
 0x19c   : > { %p594_p0 = scmp.lt.u32.totalorder %s592_s16, %s588_s7  ;;  %p596_p6 = scmp.lt.u32.totalorder %s588_s7, %s759_s30 }
 0x19d   : > { %p590_p11 = pnand %p589_p8, %p815_p9 }
 0x19e   : > { %p595_p5 = por %p594_p0, %p593_p1 }
 0x19f   : > { %p591_p13 = pneg %p590_p11 }
 0x1a0   : > { %p597_p10 = por %p596_p6, %p595_p5 }
 0x1a2   : > { %p598_p12 = pnand %p597_p10, %p591_p13 }
 0x1a4   : > { %601 = shalt.err (!%p598_p12)
}
 0x1a5   : > { %s648_s23 = smov 128   ;;  %s649_s21 = smov 8  }
 0x1a6   : > { %493 = dma.vmem_to_hbm [thread:$0]  (%p815_p9), %s754_s26, 256, %s759_s30, %s761_s3, %s648_s23, %s648_s23, %s649_s21  }
 0x1a7 PF: > { %p505_p2 = scmp.ge.s32.totalorder %s640_s12, 2  ;;  %s321_s24 = sand.u32 1, %s628_s9  }
 0x1a8   : > { %p816_p3 = scmp.ne.s32.totalorder %s809_s20, 0  ;;  %s322_s25 = scalar_lea.sflag [#allocation4], %s321_s24 }
 0x1aa   : > { %p500_p4 = pnand %p505_p2, %p816_p3 }
 0x1ac   : > { %623 = dma.done.wait (!%p500_p4), %s322_s25, 256  }
 0x1ad   : > { %625 = vsyncadd (!%p500_p4), %s322_s25, 4294967040  ;;  %p13_p7 = scmp.ge.s32.totalorder %s690_s15, 4   ;;  %s817_s9 = smov %s632_s10 }
 0x1ae   : > { %s818_s10 = smov %s636_s11  ;;  %s819_s11 = smov %s701_s18 }
 0x1af   : > { %s820_s12 = smov %s690_s15  ;;  %15 = sbr.rel (!%p13_p7) target bundleno = 4 (0x4), region = 68 }
 0x1b6   :  { %327 = vsyncpa [#allocation3], 1 }
 0x1b7   :  { %329 = vsyncpa [#allocation3 + $0x1], 1 }
 0x1b8   :  { %330 = vsyncpa [#allocation4], 1 }
 0x1b9   :  { %332 = vsyncpa [#allocation4 + $0x1], 1 }

</bundles_post_ra>
